<compile_context>
chip_gen: v6e
topology: v6e:2x2x1
jax: 0.10.0
libtpu: 0.0.40
codegen_flags: <defaults>
</compile_context>

<pallas_src>
import jax
import jax.numpy as jnp
from jax.experimental import pallas as pl
from jax.experimental.pallas import tpu as pltpu

TAU = 2.0
INV_TAU = 1.0 / TAU
V_TH = 1.0


def _snn_channel_mixing_kernel(x_ref, w1t_ref, b1_ref, w2t_ref, b2_ref,
                               out_ref, v1_ref, v2_ref):
    """One (row-tile, time-step) grid point.

    NOTE: the time axis MUST remain the innermost ("arbitrary") grid axis.
    The membrane-potential scratch (v1_ref, v2_ref) is carried across t and
    re-initialised at t == 0 for each row tile; reordering the grid would
    leak LIF state across tiles.

    x_ref:    (1, tile_m, Cp)  packed input features at time t
    w*t_ref:  (Cp, Cp)         pre-transposed, block-diagonal-packed weights
    b*_ref:   (1, Cp)          packed biases
    out_ref:  (1, tile_m, Cp)  output spikes
    v*_ref:   (tile_m, Cp)     LIF membrane potentials (persist across t)
    """
    t = pl.program_id(1)

    @pl.when(t == 0)
    def _():
        v1_ref[...] = jnp.zeros_like(v1_ref)
        v2_ref[...] = jnp.zeros_like(v2_ref)

    x = x_ref[0]

    # fc1: weights already transposed + packed in the wrapper -> no in-kernel .T
    y1 = jnp.dot(x, w1t_ref[...],
                 preferred_element_type=jnp.float32) + b1_ref[...]

    # LIF1
    v1 = v1_ref[...]
    h1 = v1 + (y1 - v1) * INV_TAU
    spk1 = h1 >= V_TH
    s1 = spk1.astype(jnp.float32)
    v1_ref[...] = jnp.where(spk1, 0.0, h1)

    # fc2 + residual (residual in the PyTorch module is the pre-LIF1 fc1 out)
    y2 = (jnp.dot(s1, w2t_ref[...], preferred_element_type=jnp.float32)
          + b2_ref[...] + y1)

    # LIF2
    v2 = v2_ref[...]
    h2 = v2 + (y2 - v2) * INV_TAU
    spk2 = h2 >= V_TH
    v2_ref[...] = jnp.where(spk2, 0.0, h2)

    out_ref[0] = spk2.astype(out_ref.dtype)


def _round_up(x, m):
    return -(-x // m) * m


def _block_diag_repeat(wt, g):
    """Repeat a (C, C) matrix g times along the diagonal -> (g*C, g*C)."""
    if g == 1:
        return wt
    c = wt.shape[0]
    eye = jnp.eye(g, dtype=wt.dtype)
    bd = eye[:, :, None, None] * wt[None, None, :, :]          # (g, g, C, C)
    return bd.transpose(0, 2, 1, 3).reshape(g * c, g * c)


def snn_channel_mixing_block(feature_map, w1, b1, w2, b2, *, tile_m=512):
    """feature_map: (T, B, C, H, W) float32 -> (T, B, C, H, W) spikes."""
    T, B, C, H, W = feature_map.shape
    N = B * H * W

    # channels-last, flatten spatial: (T, N, C)
    # TODO(synk): if the surrounding model can stay channels-last end-to-end,
    # these two full-tensor transposes (HBM read+write each) can be dropped.
    x = jnp.transpose(feature_map, (0, 1, 3, 4, 2)).reshape(T, N, C)

    # Lane-dense packing: G channel-groups per 128-wide row (C=32 -> G=4).
    if C < 128 and 128 % C == 0:
        G = 128 // C
    else:
        G = 1
    Cp = G * C

    # Row tiling in packed rows.  Keep >= 2 parallel tiles when possible
    # (v7x megacore), tiles a multiple of 8 sublanes, capped at tile_m.
    M_raw = -(-N // G)
    if M_raw <= 8:
        tile_m_eff = M_raw            # single tile == full dim (always legal)
        M = M_raw
    else:
        tile_m_eff = min(tile_m, _round_up(max(8, -(-M_raw // 2)), 8))
        M = _round_up(M_raw, tile_m_eff)

    N_pad = M * G
    if N_pad != N:
        x = jnp.pad(x, ((0, 0), (0, N_pad - N), (0, 0)))
    xp = x.reshape(T, M, Cp)

    # Pre-transposed, block-diagonal-packed weights / tiled biases (built once
    # in the wrapper, DMA'd into VMEM once since their block index is constant).
    w1t_p = _block_diag_repeat(w1.T, G)
    w2t_p = _block_diag_repeat(w2.T, G)
    b1_p = jnp.tile(b1, G).reshape(1, Cp)
    b2_p = jnp.tile(b2, G).reshape(1, Cp)

    grid = (M // tile_m_eff, T)   # row tiles outer ("parallel"), time inner

    out = pl.pallas_call(
        _snn_channel_mixing_kernel,
        out_shape=jax.ShapeDtypeStruct((T, M, Cp), feature_map.dtype),
        grid_spec=pltpu.PrefetchScalarGridSpec(
            num_scalar_prefetch=0,
            grid=grid,
            in_specs=[
                pl.BlockSpec((1, tile_m_eff, Cp), lambda i, t: (t, i, 0)),  # x
                pl.BlockSpec((Cp, Cp), lambda i, t: (0, 0)),                # w1^T
                pl.BlockSpec((1, Cp), lambda i, t: (0, 0)),                 # b1
                pl.BlockSpec((Cp, Cp), lambda i, t: (0, 0)),                # w2^T
                pl.BlockSpec((1, Cp), lambda i, t: (0, 0)),                 # b2
            ],
            out_specs=pl.BlockSpec((1, tile_m_eff, Cp), lambda i, t: (t, i, 0)),
            scratch_shapes=[
                pltpu.VMEM((tile_m_eff, Cp), jnp.float32),   # v1 membrane
                pltpu.VMEM((tile_m_eff, Cp), jnp.float32),   # v2 membrane
            ],
        ),
        compiler_params=pltpu.CompilerParams(
            dimension_semantics=("parallel", "arbitrary")),
    )(xp, w1t_p, b1_p, w2t_p, b2_p)

    # Unpack, drop row padding, back to (T, B, C, H, W).
    out = out.reshape(T, N_pad, C)[:, :N, :]
    out = out.reshape(T, B, H, W, C)
    return jnp.transpose(out, (0, 1, 4, 2, 3))


def snn_channel_mixing_block_ref(feature_map, w1, b1, w2, b2):
    """Pure-JAX reference with identical semantics."""
    x = jnp.transpose(feature_map, (0, 1, 3, 4, 2))  # (T, B, H, W, C)
    T = x.shape[0]
    v1 = jnp.zeros_like(x[0])
    v2 = jnp.zeros_like(x[0])
    outs = []
    for t in range(T):
        y1 = x[t] @ w1.T + b1
        h1 = v1 + (y1 - v1) / TAU
        s1 = (h1 >= V_TH).astype(jnp.float32)
        v1 = h1 * (1.0 - s1)
        y2 = s1 @ w2.T + b2 + y1
        h2 = v2 + (y2 - v2) / TAU
        s2 = (h2 >= V_TH).astype(jnp.float32)
        v2 = h2 * (1.0 - s2)
        outs.append(s2)
    out = jnp.stack(outs, 0)
    return jnp.transpose(out, (0, 1, 4, 2, 3))


if __name__ == "__main__":
    # Small shapes: T=4 time steps, batch=2, channels=32, spatial 8x8.
    T, B, C, H, W = 4, 2, 32, 8, 8

    key = jax.random.PRNGKey(0)
    k_x, k_w1, k_b1, k_w2, k_b2 = jax.random.split(key, 5)

    # Deterministic nn.Linear-style init: U(-1/sqrt(C), 1/sqrt(C)).
    bound = 1.0 / (C ** 0.5)
    w1 = jax.random.uniform(k_w1, (C, C), jnp.float32, -bound, bound)
    b1 = jax.random.uniform(k_b1, (C,), jnp.float32, -bound, bound)
    w2 = jax.random.uniform(k_w2, (C, C), jnp.float32, -bound, bound)
    b2 = jax.random.uniform(k_b2, (C,), jnp.float32, -bound, bound)

    feature_map = jax.random.normal(k_x, (T, B, C, H, W), jnp.float32) * 3.0

    out = snn_channel_mixing_block(feature_map, w1, b1, w2, b2)
    out = jax.block_until_ready(out)

    ref = snn_channel_mixing_block_ref(feature_map, w1, b1, w2, b2)
    assert out.shape == (T, B, C, H, W)
    assert jnp.allclose(out, ref, atol=1e-5), "mismatch vs pure-JAX reference"

    print("KERNEL_OK")
</pallas_src>

<mosaic_0001>
module attributes {stable_mosaic.version = 11 : i64} {
  func.func @_snn_channel_mixing_kernel(%arg0: i32, %arg1: i32, %arg2: memref<1x16x128xf32, #tpu.memory_space<vmem>>, %arg3: memref<128x128xf32, #tpu.memory_space<vmem>>, %arg4: memref<1x128xf32, #tpu.memory_space<vmem>>, %arg5: memref<128x128xf32, #tpu.memory_space<vmem>>, %arg6: memref<1x128xf32, #tpu.memory_space<vmem>>, %arg7: memref<1x16x128xf32, #tpu.memory_space<vmem>>, %arg8: memref<16x128xf32, #tpu.memory_space<vmem>>, %arg9: memref<16x128xf32, #tpu.memory_space<vmem>>) attributes {dimension_semantics = [#tpu.dimension_semantics<parallel>, #tpu.dimension_semantics<arbitrary>], iteration_bounds = array<i64: 2, 4>, scalar_prefetch = 0 : i64, scratch_operands = 2 : i64, tpu.core_type = #tpu.core_type<tc>, window_params = [{transform_indices = @transform_0, window_bounds = array<i64: 1, 16, 128>}, {pipeline_mode = #tpu.pipeline_mode<synchronous>, transform_indices = @transform_1, window_bounds = array<i64: 128, 128>}, {pipeline_mode = #tpu.pipeline_mode<synchronous>, transform_indices = @transform_2, window_bounds = array<i64: 1, 128>}, {pipeline_mode = #tpu.pipeline_mode<synchronous>, transform_indices = @transform_3, window_bounds = array<i64: 128, 128>}, {pipeline_mode = #tpu.pipeline_mode<synchronous>, transform_indices = @transform_4, window_bounds = array<i64: 1, 128>}, {transform_indices = @transform_5, window_bounds = array<i64: 1, 16, 128>}]} {
    %c0_i32 = arith.constant 0 : i32
    %0 = arith.cmpi eq, %arg1, %c0_i32 : i32
    %1 = arith.extui %0 : i1 to i32
    %c0_i32_0 = arith.constant 0 : i32
    %2 = arith.cmpi ne, %1, %c0_i32_0 : i32
    scf.if %2 {
      %cst_29 = arith.constant 0.000000e+00 : f32
      %43 = vector.broadcast %cst_29 : f32 to vector<16x128xf32>
      %c0_30 = arith.constant 0 : index
      %c0_31 = arith.constant 0 : index
      %44 = vector.load %arg8[%c0_30, %c0_31] : memref<16x128xf32, #tpu.memory_space<vmem>>, vector<16x128xf32>
      tpu.vector_store %arg8[%c0_30, %c0_31], %43 {strides = array<i32>} : memref<16x128xf32, #tpu.memory_space<vmem>>, vector<16x128xf32>,
      %cst_32 = arith.constant 0.000000e+00 : f32
      %45 = vector.broadcast %cst_32 : f32 to vector<16x128xf32>
      %c0_33 = arith.constant 0 : index
      %c0_34 = arith.constant 0 : index
      %46 = vector.load %arg9[%c0_33, %c0_34] : memref<16x128xf32, #tpu.memory_space<vmem>>, vector<16x128xf32>
      tpu.vector_store %arg9[%c0_33, %c0_34], %45 {strides = array<i32>} : memref<16x128xf32, #tpu.memory_space<vmem>>, vector<16x128xf32>,
    } else {
    }
    %c0 = arith.constant 0 : index
    %c0_1 = arith.constant 0 : index
    %c0_2 = arith.constant 0 : index
    %3 = vector.load %arg2[%c0, %c0_1, %c0_2] : memref<1x16x128xf32, #tpu.memory_space<vmem>>, vector<1x16x128xf32>
    %4 = vector.shape_cast %3 : vector<1x16x128xf32> to vector<16x128xf32>
    %c0_3 = arith.constant 0 : index
    %c0_4 = arith.constant 0 : index
    %5 = vector.load %arg3[%c0_3, %c0_4] : memref<128x128xf32, #tpu.memory_space<vmem>>, vector<128x128xf32>
    %cst = arith.constant dense<0.000000e+00> : vector<16x128xf32>
    %6 = tpu.matmul %4, %5, %cst {dimension_numbers = #tpu.dot_dimension_numbers<[1], [0], [0], [1], [0, 0, 1, 1], [], []>} : vector<16x128xf32>, vector<128x128xf32>, vector<16x128xf32> -> vector<16x128xf32>
    %c0_5 = arith.constant 0 : index
    %c0_6 = arith.constant 0 : index
    %7 = vector.load %arg4[%c0_5, %c0_6] : memref<1x128xf32, #tpu.memory_space<vmem>>, vector<1x128xf32>
    %8 = vector.broadcast %7 : vector<1x128xf32> to vector<16x128xf32>
    %9 = arith.addf %6, %8 : vector<16x128xf32>
    %c0_7 = arith.constant 0 : index
    %c0_8 = arith.constant 0 : index
    %10 = vector.load %arg8[%c0_7, %c0_8] : memref<16x128xf32, #tpu.memory_space<vmem>>, vector<16x128xf32>
    %11 = arith.subf %9, %10 : vector<16x128xf32>
    %cst_9 = arith.constant 5.000000e-01 : f32
    %12 = vector.broadcast %cst_9 : f32 to vector<16x128xf32>
    %13 = arith.mulf %11, %12 : vector<16x128xf32>
    %14 = arith.addf %10, %13 : vector<16x128xf32>
    %cst_10 = arith.constant 1.000000e+00 : f32
    %15 = vector.broadcast %cst_10 : f32 to vector<16x128xf32>
    %16 = arith.cmpf oge, %14, %15 : vector<16x128xf32>
    %17 = arith.extui %16 : vector<16x128xi1> to vector<16x128xi32>
    %18 = arith.sitofp %17 : vector<16x128xi32> to vector<16x128xf32>
    %cst_11 = arith.constant 0.000000e+00 : f32
    %19 = vector.broadcast %cst_11 : f32 to vector<16x128xf32>
    %20 = arith.select %16, %19, %14 : vector<16x128xi1>, vector<16x128xf32>
    %c0_12 = arith.constant 0 : index
    %c0_13 = arith.constant 0 : index
    %21 = vector.load %arg8[%c0_12, %c0_13] : memref<16x128xf32, #tpu.memory_space<vmem>>, vector<16x128xf32>
    tpu.vector_store %arg8[%c0_12, %c0_13], %20 {strides = array<i32>} : memref<16x128xf32, #tpu.memory_space<vmem>>, vector<16x128xf32>,
    %c0_14 = arith.constant 0 : index
    %c0_15 = arith.constant 0 : index
    %22 = vector.load %arg5[%c0_14, %c0_15] : memref<128x128xf32, #tpu.memory_space<vmem>>, vector<128x128xf32>
    %cst_16 = arith.constant dense<0.000000e+00> : vector<16x128xf32>
    %23 = tpu.matmul %18, %22, %cst_16 {dimension_numbers = #tpu.dot_dimension_numbers<[1], [0], [0], [1], [0, 0, 1, 1], [], []>} : vector<16x128xf32>, vector<128x128xf32>, vector<16x128xf32> -> vector<16x128xf32>
    %c0_17 = arith.constant 0 : index
    %c0_18 = arith.constant 0 : index
    %24 = vector.load %arg6[%c0_17, %c0_18] : memref<1x128xf32, #tpu.memory_space<vmem>>, vector<1x128xf32>
    %25 = vector.broadcast %24 : vector<1x128xf32> to vector<16x128xf32>
    %26 = arith.addf %23, %25 : vector<16x128xf32>
    %27 = arith.addf %26, %9 : vector<16x128xf32>
    %c0_19 = arith.constant 0 : index
    %c0_20 = arith.constant 0 : index
    %28 = vector.load %arg9[%c0_19, %c0_20] : memref<16x128xf32, #tpu.memory_space<vmem>>, vector<16x128xf32>
    %29 = arith.subf %27, %28 : vector<16x128xf32>
    %cst_21 = arith.constant 5.000000e-01 : f32
    %30 = vector.broadcast %cst_21 : f32 to vector<16x128xf32>
    %31 = arith.mulf %29, %30 : vector<16x128xf32>
    %32 = arith.addf %28, %31 : vector<16x128xf32>
    %cst_22 = arith.constant 1.000000e+00 : f32
    %33 = vector.broadcast %cst_22 : f32 to vector<16x128xf32>
    %34 = arith.cmpf oge, %32, %33 : vector<16x128xf32>
    %cst_23 = arith.constant 0.000000e+00 : f32
    %35 = vector.broadcast %cst_23 : f32 to vector<16x128xf32>
    %36 = arith.select %34, %35, %32 : vector<16x128xi1>, vector<16x128xf32>
    %c0_24 = arith.constant 0 : index
    %c0_25 = arith.constant 0 : index
    %37 = vector.load %arg9[%c0_24, %c0_25] : memref<16x128xf32, #tpu.memory_space<vmem>>, vector<16x128xf32>
    tpu.vector_store %arg9[%c0_24, %c0_25], %36 {strides = array<i32>} : memref<16x128xf32, #tpu.memory_space<vmem>>, vector<16x128xf32>,
    %38 = arith.extui %34 : vector<16x128xi1> to vector<16x128xi32>
    %39 = arith.sitofp %38 : vector<16x128xi32> to vector<16x128xf32>
    %c0_26 = arith.constant 0 : index
    %c0_27 = arith.constant 0 : index
    %c0_28 = arith.constant 0 : index
    %40 = vector.load %arg7[%c0_26, %c0_27, %c0_28] : memref<1x16x128xf32, #tpu.memory_space<vmem>>, vector<1x16x128xf32>
    %41 = vector.shape_cast %40 : vector<1x16x128xf32> to vector<16x128xf32>
    %42 = vector.shape_cast %39 : vector<16x128xf32> to vector<1x16x128xf32>
    tpu.vector_store %arg7[%c0_26, %c0_27, %c0_28], %42 {strides = array<i32>} : memref<1x16x128xf32, #tpu.memory_space<vmem>>, vector<1x16x128xf32>,
    return
  }
  func.func @transform_0(%arg0: i32, %arg1: i32) -> (i32, i32, i32) {
    %c0_i32 = arith.constant 0 : i32
    %c0_i32_0 = arith.constant 0 : i32
    return %arg1, %arg0, %c0_i32 : i32, i32, i32
  }
  func.func @transform_1(%arg0: i32, %arg1: i32) -> (i32, i32) {
    %c0_i32 = arith.constant 0 : i32
    %c0_i32_0 = arith.constant 0 : i32
    %c0_i32_1 = arith.constant 0 : i32
    return %c0_i32, %c0_i32_0 : i32, i32
  }
  func.func @transform_2(%arg0: i32, %arg1: i32) -> (i32, i32) {
    %c0_i32 = arith.constant 0 : i32
    %c0_i32_0 = arith.constant 0 : i32
    %c0_i32_1 = arith.constant 0 : i32
    return %c0_i32, %c0_i32_0 : i32, i32
  }
  func.func @transform_3(%arg0: i32, %arg1: i32) -> (i32, i32) {
    %c0_i32 = arith.constant 0 : i32
    %c0_i32_0 = arith.constant 0 : i32
    %c0_i32_1 = arith.constant 0 : i32
    return %c0_i32, %c0_i32_0 : i32, i32
  }
  func.func @transform_4(%arg0: i32, %arg1: i32) -> (i32, i32) {
    %c0_i32 = arith.constant 0 : i32
    %c0_i32_0 = arith.constant 0 : i32
    %c0_i32_1 = arith.constant 0 : i32
    return %c0_i32, %c0_i32_0 : i32, i32
  }
  func.func @transform_5(%arg0: i32, %arg1: i32) -> (i32, i32, i32) {
    %c0_i32 = arith.constant 0 : i32
    %c0_i32_0 = arith.constant 0 : i32
    return %arg1, %arg0, %c0_i32 : i32, i32, i32
  }
}

</mosaic_0001>

<bundles_post_ra>
// kernel: tpu_custom_call.1
= control target key start
LH: loop header
LB: loop body
LE: loop exit
PB: predicated region body
PF: predicated region fallthrough
CT: control target
= control target key end

     0   :  { %s1369_s0 = inlined_call_operand.hbm [shape: f32[4,32,128], index: 0, kind: input, shape index: {}]   ;;  %s1370_s1 = inlined_call_operand.hbm [shape: f32[128,128], index: 1, kind: input, shape index: {}]   ;;  %s1371_s2 = inlined_call_operand.vmem [shape: f32[1,128], index: 2, kind: input, shape index: {}]   ;;  %s1372_s3 = inlined_call_operand.hbm [shape: f32[128,128], index: 3, kind: input, shape index: {}]   ;;  %s1373_s4 = inlined_call_operand.vmem [shape: f32[1,128], index: 4, kind: input, shape index: {}]   ;;  %s1374_s5 = inlined_call_operand.hbm [shape: f32[4,32,128], index: 5, kind: output, shape index: {}]  }
   0x1   :  { %1384 = sst [smem:[#allocation18_spill]] %s1370_s1 }
   0x2   :  { %1385 = sst [smem:[#allocation19_spill]] %s1372_s3 }
   0x3   :  { %1386 = sst [smem:[#allocation20_spill]] %s1373_s4 }
   0x4   :  { %1387 = sst [smem:[#allocation21_spill]] %s1374_s5 }
   0x5   :  { %10 = vsyncpa [#allocation5], 0 }
   0x6   :  { %12 = vsyncpa [#allocation5 + $0x1], 0 }
   0x7   :  { %13 = vsyncpa [#allocation8], 0 }
   0x8   :  { %14 = vsyncpa [#allocation6], 0 }
   0x9   :  { %16 = vsyncpa [#allocation6 + $0x1], 0  ;;  %s1128_s18 = smov 0   ;;  %s1130_s19 = smov 0  }
   0xa   :  { %s1132_s20 = smov 0   ;;  %s1134_s21 = smov 0  }
   0xb   :  { %s1136_s22 = smov 0   ;;  %s1138_s23 = smov 0  }
   0xc   :  { %s1140_s24 = smov 0   ;;  %s1142_s25 = smov 0  }
   0xd LB: > { %1388 = sst [smem:[#allocation14_spill]] %s1057_s18  ;;  %s663_s26 = sadd.s32 4294967295, %s1085_s25   ;;  %s1085_s25 = sphi %s1142_s25, %s22_s25   ;;  %s1081_s24 = sphi %s1140_s24, %s1419_s24   ;;  %s1077_s23 = sphi %s1138_s23, %s1418_s23   ;;  %s1073_s22 = sphi %s1136_s22, %s1417_s22   ;;  %s1069_s21 = sphi %s1134_s21, %s1416_s21   ;;  %s1065_s20 = sphi %s1132_s20, %s1415_s20   ;;  %s1061_s19 = sphi %s1130_s19, %s1414_s19   ;;  %s1057_s18 = sphi %s1128_s18, %s1413_s18  }
   0xe   : > { %s664_s27 = sadd.s32 4294967294, %s1085_s25   ;;  %p56_p0 = scmp.ne.s32.totalorder %s1061_s19, %s1057_s18 }
   0xf   : > { %p1172_p1 = scmp.eq.s32.totalorder %s663_s26, 0  ;;  %p1176_p2 = scmp.eq.s32.totalorder %s663_s26, 7 }
  0x10   : > { %p172_p3 = scmp.eq.s32.totalorder %s664_s27, 7  ;;  %p665_p5 = scmp.ge.s32.totalorder %s1085_s25, 1 }
  0x11   : > { %p1182_p4 = por %p1172_p1, %p56_p0  ;;  %p179_p7 = scmp.lt.s32.totalorder %s1085_s25, 9 }
  0x12   : > { %p1187_p6 = por %p172_p3, %p56_p0  ;;  %s1087_s8 = smov [#allocation7]  }
  0x13   : > { %p1192_p8 = pnand %p665_p5, %p179_p7  ;;  %s191_s9 = sshll.u32 %s1087_s8, 4  ;;  %s192_s9 = int_to_ptr.vmem [resolvable:$true] %s191_s9 }
  0x14   : > { %s1392_s6 = scalar_select %p1187_p6, 1, 0 }
  0x15   : > { %p811_p9 = pneg %p1192_p8  ;;  %s1088_s11 = smov [#allocation9]  }
  0x16   : > { %1393 = sst [smem:[#allocation15_spill]] %s1392_s6  ;;  %s207_s12 = sshll.u32 %s1088_s11, 4  ;;  %s208_s12 = int_to_ptr.vmem [resolvable:$true] %s207_s12 }
  0x17   : > { %p1200_p10 = pnand %p811_p9, %p1172_p1  ;;  %s916_s13 = scalar_lea.vmem %s192_s9, 2048 }
  0x18   : > { %p917_p12 = scmp.ne.s32.totalorder %s192_s9, %s916_s13  ;;  %p924_p3 = scmp.lt.s32.totalorder %s192_s9, %s192_s9 }
  0x19   : > { %p907_p11 = pneg %p1200_p10  ;;  %p925_p5 = scmp.lt.s32.totalorder %s916_s13, %s916_s13 }
  0x1b   : > { %p919_p13 = pnand %p917_p12, %p907_p11  ;;  %p926_p7 = por %p925_p5, %p924_p3 }
  0x1d   : > { %p920_p0 = pneg %p919_p13 }
  0x1f   : > { %p927_p9 = pnand %p926_p7, %p920_p0 }
  0x21   : > { %930 = shalt.err (!%p927_p9)
}
  0x22   : > { %s1375_s14 = smov 128   ;;  %s1376_s15 = smov 8  }
  0x23   : > { %s1396_s1 = sld [smem:[#allocation18_spill]]  ;;  %s942_s26 = scalar_lea.vmem %s208_s12, 2048 }
  0x24   : > { %p943_p12 = scmp.ne.s32.totalorder %s208_s12, %s942_s26  ;;  %p950_p0 = scmp.lt.s32.totalorder %s208_s12, %s208_s12 }
  0x25   : > { %p951_p5 = scmp.lt.s32.totalorder %s942_s26, %s942_s26 }
  0x26   : > { %p945_p13 = pnand %p943_p12, %p907_p11 }
  0x27   : > { %p952_p7 = por %p951_p5, %p950_p0 }
  0x28   : > { %p946_p3 = pneg %p945_p13 }
  0x29   : > { %814 = dma.hbm_to_vmem [thread:$0]  (!%p1200_p10), %s1396_s1, 2048, %s192_s9, [#allocation8], %s1375_s14, %s1375_s14, %s1376_s15  }
  0x2a   : > { %p953_p9 = pnand %p952_p7, %p946_p3 }
  0x2c   : > { %956 = shalt.err (!%p953_p9)
}
  0x2d   : > { %s1397_s3 = sld [smem:[#allocation19_spill]]  ;;  %s31_s9 = sadd.s32 1, %s1077_s23 }
  0x2e   : > { %s34_s10 = sadd.s32 1, %s1081_s24  ;;  %p32_p11 = scmp.ge.s32.totalorder %s31_s9, 4 }
  0x2f   : > { %s43_s11 = sadd.s32 1, %s1065_s20  ;;  %p50_p12 = scmp.ne.s32.totalorder %s1065_s20, %s1061_s19 }
  0x30   : > { %p51_p13 = scmp.eq.s32.totalorder %s1085_s25, 0  ;;  %s1421_s9 = smov (%p32_p11, %s31_s9), 0 }
  0x31   : > { %1398 = sst [smem:[#allocation16_spill]] %s1421_s9  ;;  %s1423_s10 = smov (!%p32_p11, %s34_s10), %s1081_s24 }
  0x32   : > { %s38_s13 = ssub.s32 %s1077_s23, %s1421_s9  ;;  %p1239_p3 = por %p51_p13, %p50_p12 }
  0x33   : > { %817 = dma.hbm_to_vmem [thread:$0]  (!%p1200_p10), %s1397_s3, 2048, %s208_s12, [#allocation8], %s1375_s14, %s1375_s14, %s1376_s15  }
  0x34   : > { %p36_p10 = scmp.ge.s32.totalorder %s1423_s10, 2  ;;  %p1245_p0 = por %p1176_p2, %p50_p12 }
  0x35   : > { %p828_p5 = scmp.lt.s32.totalorder %s1085_s25, 8  ;;  %s224_s17 = sand.u32 1, %s1065_s20  }
  0x36   : > { %s1400_s12 = scalar_select %p1245_p0, 1, 0 }
  0x37   : > { %s1425_s10 = smov (%p36_p10, %s1423_s10), 0  ;;  %s669_s26 = sshll.u32 %s224_s17, 4 }
  0x38   : > { %1401 = sst [smem:[#allocation17_spill]] %s1400_s12  ;;  %s39_s27 = ssub.s32 %s1081_s24, %s1425_s10 }
  0x39   : > { %s40_s8 = sor.u32 %s39_s27, %s38_s13  ;;  %s670_s14 = sshll.u32 %s1081_s24, 1 }
  0x3a   : > { %p41_p7 = scmp.eq.s32.totalorder %s40_s8, 0  ;;  %s671_s15 = sshll.u32 %s1077_s23, 2 }
  0x3b   : > { %s234_s1 = sadd.s32 %s671_s15, %s670_s14  ;;  %s228_s3 = scalar_lea.vmem [#allocation4], %s669_s26 }
  0x3c   : > { %s237_s29 = sshll.u32 %s228_s3, 4  ;;  %s672_s6 = sshll.u32 %s234_s1, 7  ;;  %s238_s29 = int_to_ptr.vmem [resolvable:$true] %s237_s29 }
  0x3d   : > { %s1258_s9 = scalar_select %p41_p7, %s1065_s20, %s43_s11  }
  0x3e   : > { %s236_s12 = scalar_lea.hbm %s1369_s0, %s672_s6  ;;  %p1267_p2 = pnand %p828_p5, %p1239_p3 }
  0x3f   : > { %s225_s13 = scalar_lea.sflag [#allocation5], %s224_s17  ;;  %s970_s14 = scalar_lea.vmem %s238_s29, 256 }
  0x40   : > { %p959_p9 = pneg %p1267_p2  ;;  %p971_p11 = scmp.ne.s32.totalorder %s238_s29, %s970_s14 }
  0x41   : > { %s1091_s1 = smov [#allocation4]  }
  0x42   : > { %p973_p12 = pnand %p971_p11, %p959_p9  ;;  %s975_s3 = sshll.u32 %s1091_s1, 4  ;;  %s976_s3 = int_to_ptr.vmem [resolvable:$false] %s975_s3 }
  0x43   : > { %s977_s15 = scalar_lea.vmem %s976_s3, 512  ;;  %p978_p10 = scmp.lt.s32.totalorder %s238_s29, %s976_s3 }
  0x44   : > { %p974_p13 = pneg %p973_p12  ;;  %p979_p7 = scmp.lt.s32.totalorder %s977_s15, %s970_s14 }
  0x46   : > { %p980_p6 = por %p979_p7, %p978_p10 }
  0x48   : > { %p981_p0 = pnand %p980_p6, %p974_p13 }
  0x4a   : > { %984 = shalt.err (!%p981_p0)
}
  0x4b   : > { %s1403_s5 = smov 8   ;;  %s1404_s18 = smov 128  }
  0x4c   : > { %821 = dma.hbm_to_vmem [thread:$0]  (!%p1267_p2), %s236_s12, 256, %s238_s29, %s225_s13, %s1404_s18, %s1404_s18, %s1403_s5  }
  0x4d   : > { %249 = sbr.rel (%p1192_p8) target bundleno = 554 (0x22a), region = 40  ;;  %s1281_s6 = sand.u32 (!%p1192_p8), 1, %s1061_s19  }
  0x4e   : > { %s674_s11 = sshll.u32 (!%p1192_p8), %s1281_s6, 4  ;;  %s252_s16 = scalar_lea.sflag (!%p1192_p8), [#allocation5], %s1281_s6 }
  0x4f   : > { %s1285_s17 = scalar_lea.vmem (!%p1192_p8), [#allocation4], %s674_s11 }
  0x52   : > { %1044 = dma.done.wait (%p1182_p4), %s252_s16, 256  }
  0x53   : > { %1046 = vsyncadd (%p1182_p4), %s252_s16, 4294967040 }
  0x54   : > { %1048 = dma.done.wait (%p1172_p1), [#allocation8], 4096  }
  0x55   : > { %1050 = vsyncadd (%p1172_p1), [#allocation8], 4294963200  ;;  %s1295_s4 = scalar_lea.vmem [#allocation10], %s674_s11  ;;  %p678_p6 = scmp.ne.s32.totalorder %s1069_s21, 0 }
  0x57   : > { %295 = sbr.rel (%p678_p6) target bundleno = 95 (0x5f), region = 56 }
  0x5c   : > { %v1092_v0 = vmov 0.0  }
  0x5d   : > { %296 = vst [vmem:[#allocation2] sm:$0xff] %v1092_v0  ;;  %297 = vst [vmem:[#allocation2 + $0x8] sm:$0xff] %v1092_v0 }
  0x5e   : > { %298 = vst [vmem:[#allocation3 + $0x8] sm:$0xff] %v1092_v0  ;;  %299 = vst [vmem:[#allocation3] sm:$0xff] %v1092_v0 }
  0x5f PF: > { %v317_v1 = vld [vmem:[#allocation7 + $0x78] sm:$0xff]  ;;  %v316_v2 = vld [vmem:[#allocation7 + $0x70] sm:$0xff]  ;;  %v315_v3 = vld [vmem:[#allocation7 + $0x68] sm:$0xff]  ;;  %v1093_v50 = vmov 1.0   ;;  %s1405_s26 = sld [smem:[#allocation20_spill]]  ;;  %s688_s27 = sshll.u32 %s1073_s22, 1 }
  0x60   : > { %729 = vmatprep.subr.mxu0 %v317_v1  ;;  %v314_v4 = vld [vmem:[#allocation7 + $0x60] sm:$0xff]  ;;  %v313_v6 = vld [vmem:[#allocation7 + $0x58] sm:$0xff]  ;;  %v432_v8 = vld [vmem:[#allocation9 + $0x70] sm:$0xff]  ;;  %s689_s8 = sshll.u32 %s1069_s21, 2  ;;  %s554_s14 = sshll.u32 %s1295_s4, 4  ;;  %s1314_s14 = int_to_ptr.vmem [resolvable:$true] %s554_s14 }
  0x61   : > { %730 = vmatpush3.msra.mxu0 %v317_v1  ;;  %v300_v5 = vld [vmem:[%s1285_s17] sm:$0xff]  ;;  %v433_v7 = vld [vmem:[#allocation9 + $0x78] sm:$0xff]  ;;  %v431_v10 = vld [vmem:[#allocation9 + $0x68] sm:$0xff]  ;;  %s551_s29 = sadd.s32 %s689_s8, %s688_s27  ;;  %s1406_s1 = sld [smem:[#allocation17_spill]] }
  0x62   : > { %731 = vmatprep.subr.mxu0 %v316_v2  ;;  %761 = vmatprep.mubr.f32.mxu0 %v300_v5  ;;  %v312_v9 = vld [vmem:[#allocation7 + $0x50] sm:$0xff]  ;;  %v311_v11 = vld [vmem:[#allocation7 + $0x48] sm:$0xff]  ;;  %v430_v12 = vld [vmem:[#allocation9 + $0x60] sm:$0xff]  ;;  %s690_s13 = sshll.u32 %s551_s29, 7  ;;  %s1407_s3 = sld [smem:[#allocation21_spill]] }
  0x63   : > { %732 = vmatpush3.msra.mxu0 %v316_v2  ;;  %764 = vmatprep.subr.mxu1 %v433_v7  ;;  %v310_v13 = vld [vmem:[#allocation7 + $0x40] sm:$0xff]  ;;  %v429_v14 = vld [vmem:[#allocation9 + $0x58] sm:$0xff]  ;;  %v428_v16 = vld [vmem:[#allocation9 + $0x50] sm:$0xff]  ;;  %s539_s5 = scalar_lea.sflag [#allocation6], %s1281_s6  ;;  %s985_s18 = scalar_lea.vmem %s1314_s14, 256 }
  0x64   : > { %733 = vmatprep.subr.mxu0 %v315_v3  ;;  %765 = vmatpush3.msra.mxu1 %v433_v7  ;;  %v309_v15 = vld [vmem:[#allocation7 + $0x38] sm:$0xff]  ;;  %v308_v17 = vld [vmem:[#allocation7 + $0x30] sm:$0xff]  ;;  %v427_v18 = vld [vmem:[#allocation9 + $0x48] sm:$0xff]  ;;  %p986_p1 = scmp.ne.s32.totalorder %s1314_s14, %s985_s18  ;;  %s1095_s11 = smov [#allocation10]  }
  0x65   : > { %734 = vmatpush3.msra.mxu0 %v315_v3  ;;  %766 = vmatprep.subr.mxu1 %v432_v8  ;;  %v307_v19 = vld [vmem:[#allocation7 + $0x28] sm:$0xff]  ;;  %v426_v20 = vld [vmem:[#allocation9 + $0x40] sm:$0xff]  ;;  %v425_v22 = vld [vmem:[#allocation9 + $0x38] sm:$0xff]  ;;  %v1094_v3 = vmov 0.0   ;;  %s989_s16 = sshll.u32 %s1095_s11, 4  ;;  %s990_s16 = int_to_ptr.vmem [resolvable:$false] %s989_s16 }
  0x66   : > { %735 = vmatprep.subr.mxu0 %v314_v4  ;;  %767 = vmatpush3.msra.mxu1 %v432_v8  ;;  %v306_v21 = vld [vmem:[#allocation7 + $0x20] sm:$0xff]  ;;  %v305_v23 = vld [vmem:[#allocation7 + $0x18] sm:$0xff]  ;;  %v424_v24 = vld [vmem:[#allocation9 + $0x30] sm:$0xff]  ;;  %p992_p0 = scmp.lt.s32.totalorder %s1314_s14, %s990_s16 }
  0x67   : > { %736 = vmatpush3.msra.mxu0 %v314_v4  ;;  %768 = vmatprep.subr.mxu1 %v431_v10  ;;  %v304_v25 = vld [vmem:[#allocation7 + $0x10] sm:$0xff]  ;;  %v303_v26 = vld [vmem:[#allocation7 + $0x8] sm:$0xff]  ;;  %v302_v27 = vld [vmem:[#allocation7] sm:$0xff]  ;;  %p1408_p4 = scmp.ne.s32.totalorder %s1406_s1, 0 }
  0x68   : > { %737 = vmatprep.subr.mxu0 %v313_v6  ;;  %769 = vmatpush3.msra.mxu1 %v431_v10  ;;  %v301_v28 = vld [vmem:[%s1285_s17 + $0x8] sm:$0xff]  ;;  %v422_v30 = vld [vmem:[#allocation9 + $0x20] sm:$0xff]  ;;  %v420_v32 = vld [vmem:[#allocation9 + $0x10] sm:$0xff]  ;;  %s1312_s15 = scalar_lea.hbm %s1407_s3, %s690_s13  ;;  %s991_s17 = scalar_lea.vmem %s990_s16, 512 }
  0x69   : > { %738 = vmatpush3.msra.mxu0 %v313_v6  ;;  %770 = vmatprep.subr.mxu1 %v430_v12  ;;  %v423_v29 = vld [vmem:[#allocation9 + $0x28] sm:$0xff]  ;;  %v421_v31 = vld [vmem:[#allocation9 + $0x18] sm:$0xff]  ;;  %v418_v34 = vld [vmem:[#allocation9] sm:$0xff]  ;;  %p987_p8 = pnand %p986_p1, %p1408_p4  ;;  %p993_p5 = scmp.lt.s32.totalorder %s991_s17, %s985_s18 }
  0x6a   : > { %739 = vmatprep.subr.mxu0 %v312_v9  ;;  %771 = vmatpush3.msra.mxu1 %v430_v12  ;;  %v419_v33 = vld [vmem:[#allocation9 + $0x8] sm:$0xff]  ;;  %v679_v35 = vld [vmem:[%s1371_s2] ss:$0 sm:$0xff]  ;;  %v519_v54 = vld [vmem:[#allocation3] sm:$0xff] }
  0x6b   : > { %740 = vmatpush3.msra.mxu0 %v312_v9  ;;  %772 = vmatprep.subr.mxu1 %v429_v14  ;;  %v401_v37 = vld [vmem:[#allocation2 + $0x8] sm:$0xff]  ;;  %v400_v40 = vld [vmem:[#allocation2] sm:$0xff]  ;;  %v518_v58 = vld [vmem:[#allocation3 + $0x8] sm:$0xff]  ;;  %p988_p3 = pneg %p987_p8  ;;  %p994_p2 = por %p993_p5, %p992_p0 }
  0x6c   : > { %741 = vmatprep.subr.mxu0 %v311_v11  ;;  %773 = vmatpush3.msra.mxu1 %v429_v14  ;;  %v682_v51 = vld [vmem:[%s1405_s26] ss:$0 sm:$0xff] }
  0x6d   : > { %742 = vmatpush3.msra.mxu0 %v311_v11  ;;  %774 = vmatprep.subr.mxu1 %v428_v16  ;;  %p995_p9 = pnand %p994_p2, %p988_p3 }
  0x6e   : > { %743 = vmatprep.subr.mxu0 %v310_v13  ;;  %775 = vmatpush3.msra.mxu1 %v428_v16 }
  0x6f   : > { %744 = vmatpush3.msra.mxu0 %v310_v13  ;;  %776 = vmatprep.subr.mxu1 %v427_v18 }
  0x70   : > { %745 = vmatprep.subr.mxu0 %v309_v15  ;;  %777 = vmatpush3.msra.mxu1 %v427_v18 }
  0x71   : > { %746 = vmatpush3.msra.mxu0 %v309_v15  ;;  %778 = vmatprep.subr.mxu1 %v426_v20 }
  0x72   : > { %747 = vmatprep.subr.mxu0 %v308_v17  ;;  %779 = vmatpush3.msra.mxu1 %v426_v20 }
  0x73   : > { %748 = vmatpush3.msra.mxu0 %v308_v17  ;;  %780 = vmatprep.subr.mxu1 %v425_v22 }
  0x74   : > { %749 = vmatprep.subr.mxu0 %v307_v19  ;;  %781 = vmatpush3.msra.mxu1 %v425_v22 }
  0x75   : > { %750 = vmatpush3.msra.mxu0 %v307_v19  ;;  %782 = vmatprep.subr.mxu1 %v424_v24 }
  0x76   : > { %751 = vmatprep.subr.mxu0 %v306_v21  ;;  %783 = vmatpush3.msra.mxu1 %v424_v24 }
  0x77   : > { %752 = vmatpush3.msra.mxu0 %v306_v21  ;;  %784 = vmatprep.subr.mxu1 %v423_v29 }
  0x78   : > { %753 = vmatprep.subr.mxu0 %v305_v23  ;;  %785 = vmatpush3.msra.mxu1 %v423_v29 }
  0x79   : > { %754 = vmatpush3.msra.mxu0 %v305_v23  ;;  %786 = vmatprep.subr.mxu1 %v422_v30 }
  0x7a   : > { %755 = vmatprep.subr.mxu0 %v304_v25  ;;  %787 = vmatpush3.msra.mxu1 %v422_v30 }
  0x7b   : > { %756 = vmatpush3.msra.mxu0 %v304_v25  ;;  %788 = vmatprep.subr.mxu1 %v421_v31 }
  0x7c   : > { %757 = vmatprep.subr.mxu0 %v303_v26  ;;  %789 = vmatpush3.msra.mxu1 %v421_v31 }
  0x7d   : > { %758 = vmatpush3.msra.mxu0 %v303_v26  ;;  %790 = vmatprep.subr.mxu1 %v420_v32 }
  0x7e   : > { %759 = vmatprep.subr.mxu0 %v302_v27  ;;  %791 = vmatpush3.msra.mxu1 %v420_v32 }
  0x7f   : > { %760 = vmatpush3.msra.mxu0 %v302_v27  ;;  %792 = vmatprep.subr.mxu1 %v419_v33 }
  0x80   : > { %762 = vmatmul.mubr.f32.vlgmr.msra.gmra.mxu0 %v301_v28  ;;  %793 = vmatpush3.msra.mxu1 %v419_v33 }
  0x81   : > { %794 = vmatprep.subr.mxu1 %v418_v34 }
  0x82   : > { %795 = vmatpush3.msra.mxu1 %v418_v34 }
 0x140   : > { %v763_v36 = vpop.f32.mrf.mxu0 }
 0x141   : > { %v397_v38 = vadd.f32 %v763_v36, %v679_v35 }
 0x142   : > { %v391_v39 = vpop.f32.mrf.mxu0 }
 0x143   : > { %v403_v41 = vsub.f32 %v397_v38, %v401_v37  ;;  %v392_v42 = vadd.f32 %v679_v35, %v391_v39 }
 0x145   : > { %v405_v43 = vmul.f32 0.5, %v403_v41  ;;  %v402_v44 = vsub.f32 %v392_v42, %v400_v40 }
 0x147   : > { %v407_v45 = vadd.f32 %v405_v43, %v401_v37  ;;  %v404_v46 = vmul.f32 0.5, %v402_v44 }
 0x149   : > { %v406_v47 = vadd.f32 %v404_v46, %v400_v40  ;;  %vm409_vm0 = vcmp.ge.f32.partialorder %v407_v45, 1.0 }
 0x14a   : > { %v415_v48 = vsel %vm409_vm0, 0.0, %v407_v45 }
 0x14b   : > { %vm408_vm1 = vcmp.ge.f32.partialorder %v406_v47, 1.0  ;;  %417 = vst [vmem:[#allocation2 + $0x8] sm:$0xff] %v415_v48 }
 0x14c   : > { %v414_v49 = vsel %vm408_vm1, 0.0, %v406_v47  ;;  %796 = vmatprep.mubr.msk.f32.mxu1 %vm408_vm1, %v1093_v50 }
 0x14d   : > { %416 = vst [vmem:[#allocation2] sm:$0xff] %v414_v49  ;;  %797 = vmatmul.mubr.msk.f32.vlgmr.msra.gmra.mxu1 %vm409_vm0, %v1093_v50 }
 0x20d   : > { %v798_v52 = vpop.f32.mrf.mxu1 }
 0x20e   : > { %v513_v53 = vadd.f32 %v798_v52, %v682_v51 }
 0x20f   : > { %v507_v55 = vpop.f32.mrf.mxu1 }
 0x210   : > { %v517_v56 = vadd.f32 %v513_v53, %v397_v38  ;;  %v508_v57 = vadd.f32 %v682_v51, %v507_v55 }
 0x212   : > { %v521_v59 = vsub.f32 %v517_v56, %v519_v54  ;;  %v516_v60 = vadd.f32 %v508_v57, %v392_v42 }
 0x214   : > { %v523_v61 = vmul.f32 0.5, %v521_v59  ;;  %v520_v62 = vsub.f32 %v516_v60, %v518_v58 }
 0x216   : > { %v525_v63 = vadd.f32 %v523_v61, %v519_v54  ;;  %v522_v0 = vmul.f32 0.5, %v520_v62 }
 0x218   : > { %vm527_vm2 = vcmp.ge.f32.partialorder %v525_v63, 1.0  ;;  %v524_v1 = vadd.f32 %v522_v0, %v518_v58 }
 0x219   : > { %v529_v2 = vsel %vm527_vm2, 0.0, %v525_v63  ;;  %v686_v4 = vsel %vm527_vm2, 1.0, %v1094_v3 }
 0x21a   : > { %531 = vst [vmem:[#allocation3] sm:$0xff] %v529_v2  ;;  %537 = vst [vmem:[%s1295_s4 + $0x8] sm:$0xff] %v686_v4  ;;  %vm526_vm3 = vcmp.ge.f32.partialorder %v524_v1, 1.0 }
 0x21b   : > { %v528_v5 = vsel %vm526_vm3, 0.0, %v524_v1  ;;  %v685_v6 = vsel %vm526_vm3, 1.0, %v1094_v3 }
 0x21c   : > { %530 = vst [vmem:[#allocation3 + $0x8] sm:$0xff] %v528_v5  ;;  %536 = vst [vmem:[%s1295_s4] sm:$0xff] %v685_v6 }
 0x21d   : > { %998 = shalt.err (!%p995_p9)
}
 0x21e   : > { %s999_s4 = scalar_lea.hbm %s1312_s15, 256  ;;  %s1003_s7 = scalar_lea.hbm %s1407_s3, 2048 }
 0x21f   : > { %p1000_p11 = scmp.ne.s32.totalorder %s1312_s15, %s999_s4  ;;  %p1004_p10 = scmp.lt.s32.totalorder %s1312_s15, %s1407_s3 }
 0x220   : > { %p1005_p7 = scmp.lt.s32.totalorder %s1003_s7, %s999_s4 }
 0x221   : > { %p1001_p12 = pnand %p1000_p11, %p1408_p4 }
 0x222   : > { %p1006_p6 = por %p1005_p7, %p1004_p10 }
 0x223   : > { %p1002_p13 = pneg %p1001_p12 }
 0x225   : > { %p1007_p1 = pnand %p1006_p6, %p1002_p13 }
 0x227   : > { %1010 = shalt.err (!%p1007_p1)
}
 0x228   : > { %s1096_s27 = smov 128   ;;  %s1097_s8 = smov 8  }
 0x229   : > { %809 = dma.vmem_to_hbm [thread:$0]  (%p1408_p4), %s1314_s14, 256, %s1312_s15, %s539_s5, %s1096_s27, %s1096_s27, %s1097_s8  }
 0x22a PF: > { %s1409_s29 = sld [smem:[#allocation14_spill]]  ;;  %p831_p8 = scmp.ge.s32.totalorder %s1085_s25, 2 }
 0x22b   : > { %s1410_s13 = sld [smem:[#allocation15_spill]] }
 0x230   : > { %s569_s21 = sand.u32 1, %s1409_s29  }
 0x231   : > { %p1411_p3 = scmp.ne.s32.totalorder %s1410_s13, 0  ;;  %s570_s22 = scalar_lea.sflag [#allocation6], %s569_s21 }
 0x233   : > { %p823_p0 = pnand %p831_p8, %p1411_p3 }
 0x235   : > { %p824_p5 = pneg %p823_p0 }
 0x237   : > { %1052 = dma.done.wait (%p824_p5), %s570_s22, 256  }
 0x238   : > { %1054 = vsyncadd (%p824_p5), %s570_s22, 4294967040  ;;  %s22_s25 = sadd.s32 1, %s1085_s25   ;;  %s1412_s6 = sld [smem:[#allocation16_spill]] }
 0x239   : > { %p19_p2 = scmp.ge.s32.totalorder %s22_s25, 10   ;;  %s1413_s18 = smov %s1061_s19 }
 0x23a   : > { %s1414_s19 = smov %s1065_s20  ;;  %s1415_s20 = smov %s1258_s9 }
 0x23b   : > { %s1416_s21 = smov %s1077_s23  ;;  %s1417_s22 = smov %s1081_s24 }
 0x23c   : > { %s1419_s24 = smov %s1425_s10  ;;  %21 = sbr.rel (!%p19_p2) target bundleno = 13 (0xd), region = 97 }
 0x23e   : > { %s1418_s23 = smov %s1412_s6 }
 0x241   :  { %575 = vsyncpa [#allocation5], 1 }
 0x242   :  { %577 = vsyncpa [#allocation5 + $0x1], 1 }
 0x243   :  { %578 = vsyncpa [#allocation8], 1 }
 0x244   :  { %579 = vsyncpa [#allocation6], 1 }
 0x245   :  { %581 = vsyncpa [#allocation6 + $0x1], 1 }

</bundles_post_ra>
